<compile_context>
chip_gen: v5e
topology: v5e:2x2
jax: 0.10.0
libtpu: 0.0.40
codegen_flags: <defaults>
</compile_context>

<pallas_src>
import jax
import jax.numpy as jnp
from jax.experimental import pallas as pl
from jax.experimental.pallas import tpu as pltpu


def _swish_kernel(w0_ref, x_ref, o_ref):
    # Scalar parameter lives in SMEM; fold the 1/2 factor in on the scalar path.
    half_w0 = 0.5 * w0_ref[0]
    # f32 internal math (exact sigmoid for bf16/f16 inputs; no-op for f32).
    x = x_ref[...].astype(jnp.float32)
    # x * sigmoid(w0*x) == x * 0.5*(1 + tanh(0.5*w0*x)):
    #   one EUP tanh per vreg, ~3 muls + 1 add on the VPU -> stays hidden
    #   under the HBM DMA on v5e/v6e/v7x.
    o_ref[...] = (x * (0.5 * jnp.tanh(half_w0 * x) + 0.5)).astype(o_ref.dtype)


def swish_pallas(x: jnp.ndarray, w0: jnp.ndarray) -> jnp.ndarray:
    """Applies x * sigmoid(w0 * x) elementwise. x: any shape, w0: scalar."""
    orig_shape = x.shape
    dtype = x.dtype
    n = x.size
    itemsize = jnp.dtype(dtype).itemsize
    # Native sublane tile: 8 rows for 4-byte, 16 for 2-byte, 32 for 1-byte dtypes.
    sub = max(8, 32 // itemsize)

    w0_arr = jnp.reshape(w0, (1,)).astype(jnp.float32)

    # Tiny arrays: a kernel launch is pure overhead, do it in plain jnp.
    if n < 128:
        xf = x.astype(jnp.float32)
        return (xf * jax.nn.sigmoid(w0_arr[0] * xf)).astype(dtype).reshape(orig_shape)

    # Lane width: widest candidate that divides n AND leaves at least one full
    # sublane tile of rows (skinny slabs waste 7/8+ of each vreg's sublanes).
    lane = None
    for cand in (4096, 2048, 1024, 512, 256, 128):
        if n % cand == 0 and (n // cand) >= sub:
            lane = cand
            break
    if lane is None:
        for cand in (4096, 2048, 1024, 512, 256, 128):
            if n % cand == 0:
                lane = cand  # rows < sub, but a full-extent block is always legal
                break

    tail = 0
    if lane is None:
        # Ragged size: run the kernel on the largest 128-divisible prefix and
        # handle the <128-element tail in plain jnp.  This avoids the previous
        # full-array jnp.pad + output slice (2 extra O(n) HBM passes).
        lane = 128
        tail = n % 128
    n_main = n - tail
    rows = n_main // lane

    x_flat = jnp.reshape(x, (-1,))
    x_main = x_flat if tail == 0 else jax.lax.slice(x_flat, (0,), (n_main,))
    x2d = jnp.reshape(x_main, (rows, lane))

    # ~4 MiB blocks => double-buffered in+out is ~16 MiB resident.  Good DMA
    # amortization on v6e/v7x (per-step fixed cost ~0.35 us); the explicit
    # vmem_limit_bytes below keeps it legal on v5e whose *default* scoped
    # limit is only 16 MiB (physical VMEM is >=64 MiB on all three chips).
    target_bytes = 4 * 1024 * 1024
    block_rows = max(sub, (target_bytes // (lane * itemsize)) // sub * sub)
    if block_rows >= rows:
        # Don't collapse to a single step if we can legally split in half:
        # with dimension_semantics=("parallel",), >=2 even steps lets both
        # v7x TensorCores run (harmless on v5e/v6e).
        half = rows // 2
        if half >= sub and half % sub == 0:
            block_rows = half
        else:
            block_rows = rows  # single full-extent block (always legal)
    grid = (pl.cdiv(rows, block_rows),)

    out2d = pl.pallas_call(
        _swish_kernel,
        out_shape=jax.ShapeDtypeStruct((rows, lane), dtype),
        grid=grid,
        in_specs=[
            pl.BlockSpec(memory_space=pltpu.SMEM),               # scalar w0
            pl.BlockSpec((block_rows, lane), lambda i: (i, 0)),   # x tile
        ],
        out_specs=pl.BlockSpec((block_rows, lane), lambda i: (i, 0)),
        compiler_params=pltpu.CompilerParams(
            dimension_semantics=("parallel",),       # shard steps across v7x's 2 TCs
            vmem_limit_bytes=48 * 1024 * 1024,       # 4 bufs * 4 MiB + headroom
        ),
        # TODO(synk): add input_output_aliases={1: 0} when the caller donates x
        # (would clobber the input here, so left off to preserve module semantics).
    )(w0_arr, x2d)

    out_flat = jnp.reshape(out2d, (-1,))
    if tail:
        x_tail = jax.lax.slice(x_flat, (n_main,), (n,)).astype(jnp.float32)
        o_tail = (x_tail * jax.nn.sigmoid(w0_arr[0] * x_tail)).astype(dtype)
        out_flat = jnp.concatenate([out_flat, o_tail])
    return jnp.reshape(out_flat, orig_shape)


if __name__ == "__main__":
    key = jax.random.PRNGKey(0)
    # Small NCHW input, consistent with typical conv-layer activations.
    x = jax.random.normal(key, (2, 4, 16, 16), dtype=jnp.float32)

    # Deterministic parameter init matching nn.Parameter(torch.tensor(2.0)).
    w0 = jnp.asarray(2.0, dtype=jnp.float32)

    out = swish_pallas(x, w0)
    out = jax.block_until_ready(out)

    # Reference check in plain JAX.  The tanh form is mathematically exact
    # (no approximate reciprocal any more), so a tight tolerance holds.
    ref = x * jax.nn.sigmoid(w0 * x)
    assert out.shape == x.shape and out.dtype == x.dtype
    assert jnp.allclose(out, ref, atol=1e-5, rtol=1e-5), (
        float(jnp.max(jnp.abs(out - ref)))
    )

    print("KERNEL_OK")
</pallas_src>

<mosaic_0001>
module attributes {stable_mosaic.version = 11 : i64} {
  func.func @_swish_kernel(%arg0: i32, %arg1: memref<1xf32, #tpu.memory_space<smem>>, %arg2: memref<8x256xf32, #tpu.memory_space<vmem>>, %arg3: memref<8x256xf32, #tpu.memory_space<vmem>>) attributes {dimension_semantics = [#tpu.dimension_semantics<parallel>], iteration_bounds = array<i64: 1>, scalar_prefetch = 0 : i64, scratch_operands = 0 : i64, tpu.core_type = #tpu.core_type<tc>, window_params = [{transform_indices = @transform_0, window_bounds = array<i64: 1>}, {transform_indices = @transform_1, window_bounds = array<i64: 8, 256>}, {transform_indices = @transform_2, window_bounds = array<i64: 8, 256>}]} {
    %c0 = arith.constant 0 : index
    %0 = memref.load %arg1[%c0] : memref<1xf32, #tpu.memory_space<smem>>
    %cst = arith.constant 5.000000e-01 : f32
    %1 = arith.mulf %cst, %0 : f32
    %c0_0 = arith.constant 0 : index
    %c0_1 = arith.constant 0 : index
    %2 = vector.load %arg2[%c0_0, %c0_1] : memref<8x256xf32, #tpu.memory_space<vmem>>, vector<8x256xf32>
    %3 = vector.broadcast %1 : f32 to vector<8x256xf32>
    %4 = arith.mulf %3, %2 : vector<8x256xf32>
    %5 = math.tanh %4 : vector<8x256xf32>
    %cst_2 = arith.constant 5.000000e-01 : f32
    %6 = vector.broadcast %cst_2 : f32 to vector<8x256xf32>
    %7 = arith.mulf %6, %5 : vector<8x256xf32>
    %cst_3 = arith.constant 5.000000e-01 : f32
    %8 = vector.broadcast %cst_3 : f32 to vector<8x256xf32>
    %9 = arith.addf %7, %8 : vector<8x256xf32>
    %10 = arith.mulf %2, %9 : vector<8x256xf32>
    %c0_4 = arith.constant 0 : index
    %c0_5 = arith.constant 0 : index
    %11 = vector.load %arg3[%c0_4, %c0_5] : memref<8x256xf32, #tpu.memory_space<vmem>>, vector<8x256xf32>
    tpu.vector_store %arg3[%c0_4, %c0_5], %10 {strides = array<i32>} : memref<8x256xf32, #tpu.memory_space<vmem>>, vector<8x256xf32>,
    return
  }
  func.func @transform_0(%arg0: i32) -> i32 {
    %c0_i32 = arith.constant 0 : i32
    %c0_i32_0 = arith.constant 0 : i32
    return %c0_i32 : i32
  }
  func.func @transform_1(%arg0: i32) -> (i32, i32) {
    %c0_i32 = arith.constant 0 : i32
    %c0_i32_0 = arith.constant 0 : i32
    return %arg0, %c0_i32 : i32, i32
  }
  func.func @transform_2(%arg0: i32) -> (i32, i32) {
    %c0_i32 = arith.constant 0 : i32
    %c0_i32_0 = arith.constant 0 : i32
    return %arg0, %c0_i32 : i32, i32
  }
}

</mosaic_0001>

<bundles_post_ra>
// kernel: tpu_custom_call.1
= control target key start
LH: loop header
LB: loop body
LE: loop exit
PB: predicated region body
PF: predicated region fallthrough
CT: control target
= control target key end

     0   :  { %8 = vsyncpa [#allocation4], 0  ;;  %s145_s0 = inlined_call_operand.<no memory space> [shape: f32[1], index: 0, kind: input, shape index: {}]   ;;  %s146_s1 = inlined_call_operand.hbm [shape: f32[8,256], index: 1, kind: input, shape index: {}]   ;;  %s147_s2 = inlined_call_operand.hbm [shape: f32[8,256], index: 2, kind: output, shape index: {}]  }
   0x1   :  { %9 = vsyncpa [#allocation5], 0  ;;  %s17_s11 = sshll.u32 %s146_s1, 4  ;;  %s119_s12 = smov [#allocation3]   ;;  %s18_s11 = int_to_ptr.hbm [resolvable:$true] %s17_s11 }
   0x2   :  { %s19_s13 = sshll.u32 %s119_s12, 4  ;;  %s20_s13 = int_to_ptr.vmem [resolvable:$true] %s19_s13 }
   0x3   :  { %22 = dma.hbm_to_vmem [thread:$0]  %s18_s11, 256, %s20_s13, [#allocation4]  }
   0x4   :  { %115 = dma.done.wait [#allocation4], 256  }
   0x5   :  { %116 = vsyncadd [#allocation4], 4294967040  ;;  %s28_s16 = smul.f32 0.5, %s145_s0  ;;  %v29_v1 = vld [vmem:[#allocation3] sm:$0xff]  ;;  %v30_v2 = vld [vmem:[#allocation3 + $0x8] sm:$0xff]  ;;  %s120_s1 = smov [#allocation6]  }
   0x6   :  { %s49_s17 = sshll.u32 %s120_s1, 4  ;;  %s51_s20 = sshll.u32 %s147_s2, 4  ;;  %s50_s17 = int_to_ptr.vmem [resolvable:$true] %s49_s17  ;;  %s52_s20 = int_to_ptr.hbm [resolvable:$true] %s51_s20 }
   0x7   :  { %v31_v0 = vstv %s28_s16 }
   0x8   :  { %v32_v3 = vmul.f32 %v31_v0, %v29_v1  ;;  %v33_v4 = vmul.f32 %v31_v0, %v30_v2 }
   0xa   :  { %63 = vtanh.f32 %v32_v3 }
   0xb   :  { %65 = vtanh.f32 %v33_v4 }
  0x10   :  { %v64_v5 = vpop.eup %63 }
  0x11   :  { %v66_v6 = vpop.eup %65  ;;  %v36_v7 = vmul.f32 0.5, %v64_v5 }
  0x12   :  { %v37_v8 = vmul.f32 0.5, %v66_v6 }
  0x13   :  { %v38_v9 = vadd.f32 0.5, %v36_v7 }
  0x14   :  { %v39_v10 = vadd.f32 0.5, %v37_v8 }
  0x15   :  { %v40_v11 = vmul.f32 %v38_v9, %v29_v1 }
  0x16   :  { %v41_v12 = vmul.f32 %v39_v10, %v30_v2 }
  0x17   :  { %42 = vst [vmem:[#allocation6] sm:$0xff] %v40_v11 }
  0x18   :  { %43 = vst [vmem:[#allocation6 + $0x8] sm:$0xff] %v41_v12 }
  0x19   :  { %54 = dma.vmem_to_hbm [thread:$0]  %s50_s17, 256, %s52_s20, [#allocation5]  }
  0x1a   :  { %117 = dma.done.wait [#allocation5], 256  }
  0x1b   :  { %118 = vsyncadd [#allocation5], 4294967040 }
  0x1c   :  { %59 = vsyncpa [#allocation4], 1 }
  0x1d   :  { %60 = vsyncpa [#allocation5], 1 }

</bundles_post_ra>
